<compile_context>
chip_gen: v5e
topology: v5e:2x2
jax: 0.10.0
libtpu: 0.0.40
codegen_flags: <defaults>
</compile_context>

<pallas_src>
import functools

import numpy as np
import jax
import jax.numpy as jnp
from jax import lax
from jax.experimental import pallas as pl
from jax.experimental.pallas import tpu as pltpu

NUM_EXPERTS = 3
_LANE = 128
_BF16_SUBLANE = 16


def _round_up(x, m):
    return (x + m - 1) // m * m


def _bf16_round(a):
    return np.asarray(jnp.asarray(a, dtype=jnp.float32)
                      .astype(jnp.bfloat16).astype(jnp.float32))


# --------------------------- Pass 1: gate kernel --------------------------- #

def _gate_kernel(x_ref, wg_ref, bg_ref, g_ref, acc_ref):
    k = pl.program_id(1)

    @pl.when(k == 0)
    def _init():
        # bias folded into the accumulator init (no epilogue add, fetched once)
        acc_ref[...] = jnp.broadcast_to(bg_ref[...], acc_ref.shape)

    acc_ref[...] += jnp.dot(x_ref[...], wg_ref[...],
                            preferred_element_type=jnp.float32)

    @pl.when(k == pl.num_programs(1) - 1)
    def _finalize():
        z = acc_ref[...]                              # (TB, 128) f32, lanes 0..2 real
        z0, z1, z2 = z[:, 0:1], z[:, 1:2], z[:, 2:3]
        m = jnp.maximum(jnp.maximum(z0, z1), z2)
        e0 = jnp.exp(z0 - m)
        e1 = jnp.exp(z1 - m)
        e2 = jnp.exp(z2 - m)
        inv = pl.reciprocal(e0 + e1 + e2, approx=True)   # EUP slot
        g0, g1, g2 = e0 * inv, e1 * inv, e2 * inv
        lanes = lax.broadcasted_iota(jnp.int32, g_ref.shape, 1)
        g_ref[...] = jnp.where(lanes == 0, g0,
                     jnp.where(lanes == 1, g1,
                     jnp.where(lanes == 2, g2, 0.0)))


# ----------------- Pass 2: fused expert GEMM + gated mixture ---------------- #

def _expert_kernel(keep_ref, g_ref, x_ref, w_ref, b_ref, out_ref, acc_ref,
                   *, num_classes, cp, packed):
    k = pl.program_id(1)

    @pl.when(k == 0)
    def _init():
        acc_ref[...] = jnp.broadcast_to(b_ref[...], acc_ref.shape)

    # One fused, lane-dense MXU GEMM per K-tile (all 3 experts at once).
    acc_ref[...] += jnp.dot(x_ref[...], w_ref[...],
                            preferred_element_type=jnp.float32)

    @pl.when(k == pl.num_programs(1) - 1)
    def _finalize():
        slab = acc_ref[...]                           # (TB, Nf) f32
        g0 = g_ref[:, 0:1] * keep_ref[0]              # keep mask: 3 SMEM scalars
        g1 = g_ref[:, 1:2] * keep_ref[1]
        g2 = g_ref[:, 2:3] * keep_ref[2]
        if packed:
            # experts packed contiguously inside one 128-lane block;
            # un-mix with lane rolls (XLU slot, effectively free here).
            nf = slab.shape[1]
            out = (g0 * slab
                   + g1 * pltpu.roll(slab, shift=nf - num_classes, axis=1)
                   + g2 * pltpu.roll(slab, shift=nf - 2 * num_classes, axis=1))
        else:
            # 128-aligned per-expert segments.
            out = (g0 * slab[:, 0:cp]
                   + g1 * slab[:, cp:2 * cp]
                   + g2 * slab[:, 2 * cp:3 * cp])
        out_ref[...] = out


# --------------------------------- wrapper ---------------------------------- #

class MoeGateCPallas:
    """Stateful wrapper mirroring MoeGateC's python-side state."""

    def __init__(self, in_features, num_classes, importance_threshold, key,
                 block_k=None, block_b=128):
        assert block_b % _BF16_SUBLANE == 0 and block_b >= _BF16_SUBLANE
        self.D = in_features
        self.C = num_classes
        self.importance_threshold = float(importance_threshold)
        self.expert_importance_accum = np.zeros(NUM_EXPERTS, dtype=np.float32)
        self.count = 0

        # ---- fused-weight layout (no gate lanes, minimal class padding) ----
        self.Cp = _round_up(max(num_classes, 1), _LANE)
        self.packed = (NUM_EXPERTS * num_classes <= _LANE)
        if self.packed:
            self.Nf = _LANE
            self.OutW = _LANE
            col_off = [e * num_classes for e in range(NUM_EXPERTS)]
        else:
            self.Nf = NUM_EXPERTS * self.Cp
            self.OutW = self.Cp
            col_off = [e * self.Cp for e in range(NUM_EXPERTS)]

        # ---- K tiling (largest tile within a ~24 MiB double-buffer budget) ----
        self.TB_max = int(block_b)
        d_lanes = _round_up(self.D, _LANE)
        if block_k is None:
            block_k = self._choose_block_k(d_lanes, self.TB_max, self.Nf, self.OutW)
        self.TK = min(_round_up(int(block_k), _LANE), d_lanes)
        self.Dp = _round_up(d_lanes, self.TK)
        self.NK = self.Dp // self.TK

        # ---- weights (modeled gate + expert heads) ----
        k1, k2, k3, k4 = jax.random.split(key, 4)
        scale = 0.05
        D, C = self.D, self.C
        self.wg = np.asarray(scale * jax.random.normal(k1, (D, NUM_EXPERTS), jnp.float32))
        self.bg = np.asarray(scale * jax.random.normal(k2, (NUM_EXPERTS,), jnp.float32))
        self.we = np.asarray(scale * jax.random.normal(k3, (NUM_EXPERTS, D, C), jnp.float32))
        self.be = np.asarray(scale * jax.random.normal(k4, (NUM_EXPERTS, C), jnp.float32))

        wg_pad = np.zeros((self.Dp, _LANE), np.float32)
        bg_pad = np.zeros((1, _LANE), np.float32)
        wg_pad[:D, :NUM_EXPERTS] = self.wg
        bg_pad[0, :NUM_EXPERTS] = self.bg

        we_fused = np.zeros((self.Dp, self.Nf), np.float32)
        be_fused = np.zeros((1, self.Nf), np.float32)
        for e in range(NUM_EXPERTS):
            lo = col_off[e]
            we_fused[:D, lo:lo + C] = self.we[e]
            be_fused[0, lo:lo + C] = self.be[e]

        # TODO(synk): on v5e/v6e the streamed weight could be int8-quantized
        # (fp8 on v7x) with per-column scales applied in the f32 epilogue for
        # ~2x on the weight-DMA-bound part; kept bf16 to match the reference.
        self.wg_pad = jnp.asarray(wg_pad).astype(jnp.bfloat16)
        self.bg_pad = jnp.asarray(bg_pad)
        self.we_fused = jnp.asarray(we_fused).astype(jnp.bfloat16)
        self.be_fused = jnp.asarray(be_fused)

    # ---------------------------- sizing helpers ---------------------------- #

    @staticmethod
    def _choose_block_k(d_lanes, tb, nf, out_w, budget=24 * 1024 * 1024):
        best = _LANE
        tk = _LANE
        while tk <= min(2048, d_lanes):
            need = (2 * tb * tk * 2          # x tile, bf16, double-buffered
                    + 2 * tk * nf * 2        # fused weight tile, bf16, double-buffered
                    + 2 * tb * _LANE * 4     # g tile (pass 2)
                    + tb * nf * 4            # f32 accumulator scratch
                    + 2 * tb * out_w * 4     # output tile
                    + 2 * nf * 4 + 2 * _LANE * 4)   # biases
            if need <= budget:
                best = tk
            tk += _LANE
        return best

    def _vmem_limit(self, tb):
        need = (2 * tb * self.TK * 2 + 2 * self.TK * self.Nf * 2
                + 2 * tb * _LANE * 4 + tb * self.Nf * 4
                + 2 * tb * self.OutW * 4 + 2 * self.Nf * 4 + 2 * _LANE * 4)
        # cap at 64 MiB so the explicit limit remains valid on v7x as well.
        return int(min(max(2 * need, 32 * 1024 * 1024), 64 * 1024 * 1024))

    # ------------------------------ pallas calls ----------------------------- #

    def _gate_call(self, x_pad, bp, tb, nb):
        return pl.pallas_call(
            _gate_kernel,
            out_shape=jax.ShapeDtypeStruct((bp, _LANE), jnp.float32),
            grid=(nb, self.NK),
            in_specs=[
                pl.BlockSpec((tb, self.TK), lambda b, k: (b, k)),        # x
                pl.BlockSpec((self.TK, _LANE), lambda b, k: (k, 0)),     # gate W
                pl.BlockSpec((1, _LANE), lambda b, k: (0, 0)),           # gate bias
            ],
            out_specs=pl.BlockSpec((tb, _LANE), lambda b, k: (b, 0)),
            scratch_shapes=[pltpu.VMEM((tb, _LANE), jnp.float32)],
            compiler_params=pltpu.CompilerParams(
                dimension_semantics=("parallel", "arbitrary"),
                vmem_limit_bytes=self._vmem_limit(tb)),
        )(x_pad, self.wg_pad, self.bg_pad)

    def _expert_call(self, keep, g_pad, x_pad, bp, tb, nb):
        kernel = functools.partial(_expert_kernel, num_classes=self.C,
                                   cp=self.Cp, packed=self.packed)
        # TODO(synk): if the weight DMA is still exposed at production sizes,
        # add pipeline_mode=pl.Buffered(3) on the fused-weight BlockSpec only.
        return pl.pallas_call(
            kernel,
            out_shape=jax.ShapeDtypeStruct((bp, self.OutW), jnp.float32),
            grid=(nb, self.NK),
            in_specs=[
                pl.BlockSpec(memory_space=pltpu.MemorySpace.SMEM),        # keep (3,)
                pl.BlockSpec((tb, _LANE), lambda b, k: (b, 0)),           # g
                pl.BlockSpec((tb, self.TK), lambda b, k: (b, k)),         # x
                pl.BlockSpec((self.TK, self.Nf), lambda b, k: (k, 0)),    # fused experts
                pl.BlockSpec((1, self.Nf), lambda b, k: (0, 0)),          # fused bias
            ],
            out_specs=pl.BlockSpec((tb, self.OutW), lambda b, k: (b, 0)),
            scratch_shapes=[pltpu.VMEM((tb, self.Nf), jnp.float32)],
            compiler_params=pltpu.CompilerParams(
                dimension_semantics=("parallel", "arbitrary"),
                vmem_limit_bytes=self._vmem_limit(tb)),
        )(keep, g_pad, x_pad, self.we_fused, self.be_fused)

    # --------------------------------- forward ------------------------------- #

    def forward(self, x):
        x = jnp.asarray(x, dtype=jnp.float32)
        B = x.shape[0]
        x_flat = x.reshape(B, -1)
        assert x_flat.shape[1] == self.D

        bp = _round_up(max(B, 1), _BF16_SUBLANE)      # bf16 sublane packing
        if bp <= self.TB_max:
            tb, nb = bp, 1
        else:
            tb = self.TB_max
            bp = _round_up(bp, tb)
            nb = bp // tb
        # cast to bf16 first, then pad (no full padded f32 copy through HBM)
        x_pad = jnp.pad(x_flat.astype(jnp.bfloat16),
                        ((0, bp - B), (0, self.Dp - self.D)))

        # ---- pass 1: gate softmax ----
        g_pad = self._gate_call(x_pad, bp, tb, nb)            # (bp, 128) f32

        # ---- hard mean constraint (3 scalars; exact torch formula) ----
        gsum = jnp.sum(g_pad[:B, :NUM_EXPERTS], axis=0)       # g.sum(dim=0)
        count_new = self.count + 1                            # count += 1 before the mask
        accum_new = jnp.asarray(self.expert_importance_accum, jnp.float32) + gsum
        mean_imp = jnp.sum(accum_new) / 3.0
        rel = (accum_new - mean_imp) / mean_imp
        mean_constrain = rel / float(B) / float(count_new)
        mean_importance = mean_constrain - mean_imp
        # the torch `g > 0` guard is redundant: softmax outputs are strictly > 0
        keep = jnp.where(mean_importance > self.importance_threshold,
                         0.0, 1.0).astype(jnp.float32)

        # ---- pass 2: fused expert GEMM + gated mixture ----
        out_pad = self._expert_call(keep, g_pad, x_pad, bp, tb, nb)

        # host-side state update (matches .cpu().detach().numpy() accumulation)
        self.expert_importance_accum = (
            self.expert_importance_accum + np.asarray(gsum, dtype=np.float32))
        self.count = count_new
        return out_pad[:B, :self.C]

    def reset_importance_accum(self):
        self.expert_importance_accum = np.zeros(NUM_EXPERTS, dtype=np.float32)
        self.count = 0

    # numpy reference of the same forward (bf16-rounded matmul operands, f32 math)
    def reference(self, x):
        xf = np.asarray(x, dtype=np.float32)
        B = xf.shape[0]
        xb = _bf16_round(xf.reshape(B, -1))
        wgb = _bf16_round(self.wg)
        web = _bf16_round(self.we)

        z = xb @ wgb + self.bg[None, :]
        z = z - z.max(axis=-1, keepdims=True)
        ez = np.exp(z)
        g = ez / ez.sum(axis=-1, keepdims=True)
        logits = [xb @ web[e] + self.be[e][None, :] for e in range(NUM_EXPERTS)]

        accum_new = self.expert_importance_accum + g.sum(axis=0)
        count_new = self.count + 1
        mean_imp = accum_new.sum() / 3.0
        rel = (accum_new - mean_imp) / mean_imp
        mean_constrain = rel / B / count_new
        mean_importance = mean_constrain - mean_imp
        g_clone = g.copy()
        for i in range(NUM_EXPERTS):
            if mean_importance[i] > self.importance_threshold:
                g_clone[:, i] = np.where(g_clone[:, i] > 0, 0.0, g_clone[:, i])
        return sum(g_clone[:, e:e + 1] * logits[e] for e in range(NUM_EXPERTS))


if __name__ == "__main__":
    key = jax.random.PRNGKey(0)
    kx1, kx2, kp1, kp2 = jax.random.split(key, 4)

    # --- config 1: small num_classes -> "packed" layout (Nf = 128) -----------
    B, C_IN, L = 8, 4, 64                      # NCL-like input; D = 256
    NUM_CLASSES = 16
    x1 = jax.random.normal(kx1, (B, C_IN, L), jnp.float32)
    # block_k=128 so this tiny test exercises a multi-step K reduction.
    m1 = MoeGateCPallas(in_features=C_IN * L, num_classes=NUM_CLASSES,
                        importance_threshold=0.1, key=kp1, block_k=128)

    ref = m1.reference(x1)                     # reference uses pre-call state
    out = jax.block_until_ready(m1.forward(x1))
    np.testing.assert_allclose(np.asarray(out), ref, rtol=1e-2, atol=1e-2)
    assert out.shape == (B, NUM_CLASSES)

    # second call on the same model: exercises the count / importance state
    ref = m1.reference(x1)
    out = jax.block_until_ready(m1.forward(x1))
    np.testing.assert_allclose(np.asarray(out), ref, rtol=1e-2, atol=1e-2)

    # --- config 2: larger num_classes -> "segmented" layout (Nf = 3*Cp), -----
    # --- multiple batch tiles (parallel axis) and multiple K tiles -----------
    B2, C_IN2, L2 = 20, 3, 128                 # D = 384
    NUM_CLASSES2 = 130
    x2 = jax.random.normal(kx2, (B2, C_IN2, L2), jnp.float32)
    m2 = MoeGateCPallas(in_features=C_IN2 * L2, num_classes=NUM_CLASSES2,
                        importance_threshold=0.1, key=kp2,
                        block_k=128, block_b=16)
    ref2 = m2.reference(x2)
    out2 = jax.block_until_ready(m2.forward(x2))
    np.testing.assert_allclose(np.asarray(out2), ref2, rtol=1e-2, atol=1e-2)
    assert out2.shape == (B2, NUM_CLASSES2)

    print("KERNEL_OK")
</pallas_src>

<mosaic_0001>
module attributes {stable_mosaic.version = 11 : i64} {
  func.func @_gate_kernel(%arg0: i32, %arg1: i32, %arg2: memref<16x128xbf16, #tpu.memory_space<vmem>>, %arg3: memref<128x128xbf16, #tpu.memory_space<vmem>>, %arg4: memref<1x128xf32, #tpu.memory_space<vmem>>, %arg5: memref<16x128xf32, #tpu.memory_space<vmem>>, %arg6: memref<16x128xf32, #tpu.memory_space<vmem>>) attributes {dimension_semantics = [#tpu.dimension_semantics<parallel>, #tpu.dimension_semantics<arbitrary>], iteration_bounds = array<i64: 1, 2>, scalar_prefetch = 0 : i64, scratch_operands = 1 : i64, tpu.core_type = #tpu.core_type<tc>, window_params = [{transform_indices = @transform_0, window_bounds = array<i64: 16, 128>}, {transform_indices = @transform_1, window_bounds = array<i64: 128, 128>}, {pipeline_mode = #tpu.pipeline_mode<synchronous>, transform_indices = @transform_2, window_bounds = array<i64: 1, 128>}, {transform_indices = @transform_3, window_bounds = array<i64: 16, 128>}]} {
    %c0_i32 = arith.constant 0 : i32
    %0 = arith.cmpi eq, %arg1, %c0_i32 : i32
    %1 = arith.extui %0 : i1 to i32
    %c0_i32_0 = arith.constant 0 : i32
    %2 = arith.cmpi ne, %1, %c0_i32_0 : i32
    scf.if %2 {
      %c0_9 = arith.constant 0 : index
      %c0_10 = arith.constant 0 : index
      %12 = vector.load %arg4[%c0_9, %c0_10] : memref<1x128xf32, #tpu.memory_space<vmem>>, vector<1x128xf32>
      %13 = vector.shape_cast %12 : vector<1x128xf32> to vector<1x128xf32>
      %14 = vector.broadcast %13 : vector<1x128xf32> to vector<16x128xf32>
      %c0_11 = arith.constant 0 : index
      %c0_12 = arith.constant 0 : index
      %15 = vector.load %arg6[%c0_11, %c0_12] : memref<16x128xf32, #tpu.memory_space<vmem>>, vector<16x128xf32>
      tpu.vector_store %arg6[%c0_11, %c0_12], %14 {strides = array<i32>} : memref<16x128xf32, #tpu.memory_space<vmem>>, vector<16x128xf32>,
    } else {
    }
    %c0 = arith.constant 0 : index
    %c0_1 = arith.constant 0 : index
    %3 = vector.load %arg6[%c0, %c0_1] : memref<16x128xf32, #tpu.memory_space<vmem>>, vector<16x128xf32>
    %c0_2 = arith.constant 0 : index
    %c0_3 = arith.constant 0 : index
    %4 = vector.load %arg2[%c0_2, %c0_3] : memref<16x128xbf16, #tpu.memory_space<vmem>>, vector<16x128xbf16>
    %c0_4 = arith.constant 0 : index
    %c0_5 = arith.constant 0 : index
    %5 = vector.load %arg3[%c0_4, %c0_5] : memref<128x128xbf16, #tpu.memory_space<vmem>>, vector<128x128xbf16>
    %cst = arith.constant dense<0.000000e+00> : vector<16x128xf32>
    %6 = tpu.matmul %4, %5, %cst {dimension_numbers = #tpu.dot_dimension_numbers<[1], [0], [0], [1], [0, 0, 1, 1], [], []>} : vector<16x128xbf16>, vector<128x128xbf16>, vector<16x128xf32> -> vector<16x128xf32>
    %7 = arith.addf %3, %6 : vector<16x128xf32>
    %c0_6 = arith.constant 0 : index
    %c0_7 = arith.constant 0 : index
    %8 = vector.load %arg6[%c0_6, %c0_7] : memref<16x128xf32, #tpu.memory_space<vmem>>, vector<16x128xf32>
    tpu.vector_store %arg6[%c0_6, %c0_7], %7 {strides = array<i32>} : memref<16x128xf32, #tpu.memory_space<vmem>>, vector<16x128xf32>,
    %c1_i32 = arith.constant 1 : i32
    %9 = arith.cmpi eq, %arg1, %c1_i32 : i32
    %10 = arith.extui %9 : i1 to i32
    %c0_i32_8 = arith.constant 0 : i32
    %11 = arith.cmpi ne, %10, %c0_i32_8 : i32
    scf.if %11 {
      %c0_9 = arith.constant 0 : index
      %c0_10 = arith.constant 0 : index
      %12 = vector.load %arg6[%c0_9, %c0_10] : memref<16x128xf32, #tpu.memory_space<vmem>>, vector<16x128xf32>
      %13 = vector.extract_strided_slice %12 {offsets = [0, 0], sizes = [16, 1], strides = [1, 1]} : vector<16x128xf32> to vector<16x1xf32>
      %14 = vector.extract_strided_slice %12 {offsets = [0, 1], sizes = [16, 1], strides = [1, 1]} : vector<16x128xf32> to vector<16x1xf32>
      %15 = vector.extract_strided_slice %12 {offsets = [0, 2], sizes = [16, 1], strides = [1, 1]} : vector<16x128xf32> to vector<16x1xf32>
      %16 = arith.maximumf %13, %14 : vector<16x1xf32>
      %17 = arith.maximumf %16, %15 : vector<16x1xf32>
      %18 = arith.subf %13, %17 : vector<16x1xf32>
      %19 = math.exp %18 : vector<16x1xf32>
      %20 = arith.subf %14, %17 : vector<16x1xf32>
      %21 = math.exp %20 : vector<16x1xf32>
      %22 = arith.subf %15, %17 : vector<16x1xf32>
      %23 = math.exp %22 : vector<16x1xf32>
      %24 = arith.addf %19, %21 : vector<16x1xf32>
      %25 = arith.addf %24, %23 : vector<16x1xf32>
      %26 = tpu.reciprocal %25 {approx = true} : vector<16x1xf32> -> vector<16x1xf32>
      %27 = arith.mulf %19, %26 : vector<16x1xf32>
      %28 = arith.mulf %21, %26 : vector<16x1xf32>
      %29 = arith.mulf %23, %26 : vector<16x1xf32>
      %30 = tpu.iota {dimensions = array<i32: 1>} : vector<16x128xi32>
      %c0_i32_11 = arith.constant 0 : i32
      %31 = vector.broadcast %c0_i32_11 : i32 to vector<16x128xi32>
      %32 = arith.cmpi eq, %30, %31 : vector<16x128xi32>
      %c1_i32_12 = arith.constant 1 : i32
      %33 = vector.broadcast %c1_i32_12 : i32 to vector<16x128xi32>
      %34 = arith.cmpi eq, %30, %33 : vector<16x128xi32>
      %c2_i32 = arith.constant 2 : i32
      %35 = vector.broadcast %c2_i32 : i32 to vector<16x128xi32>
      %36 = arith.cmpi eq, %30, %35 : vector<16x128xi32>
      %cst_13 = arith.constant 0.000000e+00 : f32
      %37 = vector.shape_cast %29 : vector<16x1xf32> to vector<16x1xf32>
      %38 = vector.broadcast %37 : vector<16x1xf32> to vector<16x128xf32>
      %39 = vector.broadcast %cst_13 : f32 to vector<16x128xf32>
      %40 = arith.select %36, %38, %39 : vector<16x128xi1>, vector<16x128xf32>
      %41 = vector.shape_cast %28 : vector<16x1xf32> to vector<16x1xf32>
      %42 = vector.broadcast %41 : vector<16x1xf32> to vector<16x128xf32>
      %43 = arith.select %34, %42, %40 : vector<16x128xi1>, vector<16x128xf32>
      %44 = vector.shape_cast %27 : vector<16x1xf32> to vector<16x1xf32>
      %45 = vector.broadcast %44 : vector<16x1xf32> to vector<16x128xf32>
      %46 = arith.select %32, %45, %43 : vector<16x128xi1>, vector<16x128xf32>
      %c0_14 = arith.constant 0 : index
      %c0_15 = arith.constant 0 : index
      %47 = vector.load %arg5[%c0_14, %c0_15] : memref<16x128xf32, #tpu.memory_space<vmem>>, vector<16x128xf32>
      tpu.vector_store %arg5[%c0_14, %c0_15], %46 {strides = array<i32>} : memref<16x128xf32, #tpu.memory_space<vmem>>, vector<16x128xf32>,
    } else {
    }
    return
  }
  func.func @transform_0(%arg0: i32, %arg1: i32) -> (i32, i32) {
    %c0_i32 = arith.constant 0 : i32
    return %arg0, %arg1 : i32, i32
  }
  func.func @transform_1(%arg0: i32, %arg1: i32) -> (i32, i32) {
    %c0_i32 = arith.constant 0 : i32
    %c0_i32_0 = arith.constant 0 : i32
    return %arg1, %c0_i32 : i32, i32
  }
  func.func @transform_2(%arg0: i32, %arg1: i32) -> (i32, i32) {
    %c0_i32 = arith.constant 0 : i32
    %c0_i32_0 = arith.constant 0 : i32
    %c0_i32_1 = arith.constant 0 : i32
    return %c0_i32, %c0_i32_0 : i32, i32
  }
  func.func @transform_3(%arg0: i32, %arg1: i32) -> (i32, i32) {
    %c0_i32 = arith.constant 0 : i32
    %c0_i32_0 = arith.constant 0 : i32
    return %arg0, %c0_i32 : i32, i32
  }
}

</mosaic_0001>

<bundles_post_ra>
// kernel: tpu_custom_call.1
= control target key start
LH: loop header
LB: loop body
LE: loop exit
PB: predicated region body
PF: predicated region fallthrough
CT: control target
= control target key end

     0   :  { %8 = vsyncpa [#allocation4], 0  ;;  %s1068_s0 = inlined_call_operand.hbm [shape: bf16[16,256], index: 0, kind: input, shape index: {}]   ;;  %s1069_s1 = inlined_call_operand.hbm [shape: bf16[256,128], index: 1, kind: input, shape index: {}]   ;;  %s1070_s2 = inlined_call_operand.vmem [shape: f32[1,128], index: 2, kind: input, shape index: {}]   ;;  %s1071_s3 = inlined_call_operand.hbm [shape: f32[16,128], index: 3, kind: output, shape index: {}]  }
   0x1   :  { %10 = vsyncpa [#allocation4 + $0x1], 0 }
   0x2   :  { %11 = vsyncpa [#allocation7], 0 }
   0x3   :  { %13 = vsyncpa [#allocation7 + $0x1], 0 }
   0x4   :  { %14 = vsyncpa [#allocation5], 0  ;;  %s935_s12 = smov 0   ;;  %s937_s13 = smov 0  }
   0x5   :  { %s939_s14 = smov 0   ;;  %s941_s15 = smov 0  }
   0x6   :  { %s943_s16 = smov 0   ;;  %s945_s17 = smov 0  }
   0x7 LB: > { %s588_s18 = sadd.s32 4294967295, %s900_s17   ;;  %s29_s19 = sadd.s32 1, %s896_s16  ;;  %s900_s17 = sphi %s945_s17, %s20_s17   ;;  %s896_s16 = sphi %s943_s16, %s1079_s16   ;;  %s892_s15 = sphi %s941_s15, %s1078_s15   ;;  %s888_s14 = sphi %s939_s14, %s1077_s14   ;;  %s884_s13 = sphi %s937_s13, %s1076_s13   ;;  %s880_s12 = sphi %s935_s12, %s1075_s12  }
   0x8   : > { %p30_p0 = scmp.ge.s32.totalorder %s29_s19, 2  ;;  %s41_s20 = sadd.s32 1, %s888_s14 }
   0x9   : > { %p48_p1 = scmp.ne.s32.totalorder %s888_s14, %s884_s13  ;;  %p49_p2 = scmp.eq.s32.totalorder %s900_s17, 0 }
   0xa   : > { %s1081_s19 = smov (%p30_p0, %s29_s19), 0  ;;  %p54_p4 = scmp.ne.s32.totalorder %s884_s13, %s880_s12 }
   0xb   : > { %p971_p3 = por %p49_p2, %p48_p1  ;;  %s37_s22 = ssub.s32 %s896_s16, %s1081_s19 }
   0xc   : > { %p55_p5 = scmp.eq.s32.totalorder %s588_s18, 0  ;;  %p39_p6 = scmp.eq.s32.totalorder %s37_s22, 0 }
   0xd   : > { %p666_p8 = scmp.lt.s32.totalorder %s900_s17, 2  ;;  %s989_s25 = sand.u32 1, %s888_s14  }
   0xe   : > { %p980_p7 = por %p55_p5, %p54_p4  ;;  %s592_s26 = sshll.u32 %s896_s16, 2 }
   0xf   : > { %s986_s24 = scalar_select %p39_p6, %s888_s14, %s41_s20  }
  0x10   : > { %s591_s27 = sshll.u32 %s989_s25, 3  ;;  %s165_s30 = scalar_lea.hbm %s1068_s0, %s592_s26 }
  0x11   : > { %s166_s4 = sshll.u32 %s165_s30, 4  ;;  %s158_s5 = scalar_lea.vmem [#allocation3], %s591_s27  ;;  %s167_s4 = int_to_ptr.hbm [resolvable:$true] %s166_s4 }
  0x12   : > { %s168_s6 = sshll.u32 %s158_s5, 4  ;;  %p998_p9 = pnand %p666_p8, %p971_p3  ;;  %s169_s6 = int_to_ptr.vmem [resolvable:$true] %s168_s6 }
  0x13   : > { %p596_p10 = scmp.ge.s32.totalorder %s900_s17, 1  ;;  %s155_s8 = scalar_lea.sflag [#allocation4], %s989_s25 }
  0x14   : > { %s902_s9 = smov 128   ;;  %s903_s10 = smov 64  }
  0x15   : > { %s904_s11 = smov 4   ;;  %p198_p11 = scmp.lt.s32.totalorder %s900_s17, 3 }
  0x16   : > { %662 = dma.hbm_to_vmem [thread:$0]  (!%p998_p9), %s167_s4, 128, %s169_s6, %s155_s8, %s902_s9, %s903_s10, %s904_s11  }
  0x17   : > { %s593_s12 = sshll.u32 %s989_s25, 6  ;;  %s641_s20 = sshll.u32 %s896_s16, 6 }
  0x18   : > { %p199_p12 = pnand %p596_p10, %p198_p11  ;;  %s187_s26 = scalar_lea.hbm %s1069_s1, %s641_s20 }
  0x19   : > { %s182_s27 = scalar_lea.vmem [#allocation6], %s593_s12  ;;  %s188_s29 = sshll.u32 %s187_s26, 4  ;;  %s189_s29 = int_to_ptr.hbm [resolvable:$true] %s188_s29 }
  0x1a   : > { %s190_s28 = sshll.u32 %s182_s27, 4  ;;  %s179_s30 = scalar_lea.sflag [#allocation7], %s989_s25  ;;  %s191_s28 = int_to_ptr.vmem [resolvable:$true] %s190_s28 }
  0x1b   : > { %665 = dma.hbm_to_vmem [thread:$0]  (!%p998_p9), %s189_s29, 1024, %s191_s28, %s179_s30, %s903_s10, %s903_s10, %s904_s11  }
  0x1c   : > { %202 = sbr.rel (%p199_p12) target bundleno = 844 (0x34c), region = 32  ;;  %s204_s4 = sand.u32 (!%p199_p12), 1, %s884_s13  }
  0x1d   : > { %s597_s5 = sshll.u32 (!%p199_p12), %s204_s4, 3  ;;  %s205_s6 = scalar_lea.sflag (!%p199_p12), [#allocation4], %s204_s4 }
  0x1e   : > { %s208_s8 = scalar_lea.vmem (!%p199_p12), [#allocation3], %s597_s5 }
  0x21   : > { %867 = dma.done.wait (%p980_p7), %s205_s6, 128  }
  0x22   : > { %869 = vsyncadd (%p980_p7), %s205_s6, 4294967168  ;;  %s598_s9 = sshll.u32 %s204_s4, 6  ;;  %s215_s12 = scalar_lea.sflag [#allocation7], %s204_s4 }
  0x23   : > { %s218_s20 = scalar_lea.vmem [#allocation6], %s598_s9 }
  0x24   : > { %871 = dma.done.wait (%p980_p7), %s215_s12, 1024  }
  0x25   : > { %873 = vsyncadd (%p980_p7), %s215_s12, 4294966272  ;;  %p599_p13 = scmp.ne.s32.totalorder %s892_s15, 0 }
  0x27   : > { %248 = sbr.rel (%p599_p13) target bundleno = 47 (0x2f), region = 44 }
  0x2c   : > { %v730_v0 = vld [vmem:[%s1070_s2] ss:$0 sm:$0xff] }
  0x2d   : > { %253 = vst [vmem:[#allocation2] sm:$0xff] %v730_v0 }
  0x2e   : > { %254 = vst [vmem:[#allocation2 + $0x8] sm:$0xff] %v730_v0 }
  0x2f PF: > { %v650_v1 = vld [vmem:[%s218_s20 + $0x38] sm:$0xff]  ;;  %v649_v2 = vld [vmem:[%s218_s20 + $0x30] sm:$0xff]  ;;  %v648_v3 = vld [vmem:[%s218_s20 + $0x28] sm:$0xff]  ;;  %p636_p0 = scmp.ne.s32.totalorder %s892_s15, 1 }
  0x30   : > { %329 = vmatpush.bf16.msra.mxu0 %v650_v1  ;;  %v647_v4 = vld [vmem:[%s218_s20 + $0x20] sm:$0xff]  ;;  %v646_v5 = vld [vmem:[%s218_s20 + $0x18] sm:$0xff]  ;;  %v645_v6 = vld [vmem:[%s218_s20 + $0x10] sm:$0xff]  ;;  %s905_s23 = smov (!%p636_p0), 127   ;;  %s906_s10 = smov (!%p636_p0), 126  }
  0x31   : > { %v644_v7 = vld [vmem:[%s218_s20 + $0x8] sm:$0xff]  ;;  %v643_v8 = vld [vmem:[%s218_s20] sm:$0xff]  ;;  %v642_v9 = vld [vmem:[%s208_s8] sm:$0xff]  ;;  %s907_s11 = smov (!%p636_p0), 2   ;;  %s908_s15 = smov (!%p636_p0), 1  }
  0x34   : > { %330 = vmatpush.bf16.msra.mxu0 %v649_v2  ;;  %v255_v10 = vld [vmem:[#allocation2] sm:$0xff] }
  0x35   : > { %v256_v13 = vld [vmem:[#allocation2 + $0x8] sm:$0xff] }
  0x38   : > { %331 = vmatpush.bf16.msra.mxu0 %v648_v3 }
  0x3c   : > { %332 = vmatpush.bf16.msra.mxu0 %v647_v4 }
  0x40   : > { %333 = vmatpush.bf16.msra.mxu0 %v646_v5 }
  0x44   : > { %334 = vmatpush.bf16.msra.mxu0 %v645_v6 }
  0x48   : > { %335 = vmatpush.bf16.msra.mxu0 %v644_v7 }
  0x4c   : > { %336 = vmatpush.bf16.msra.mxu0 %v643_v8 }
  0x4f   : > { %337 = vmatmul.bf16.vlgmr.msra.gmra.mxu0 %v642_v9 }
  0xcc   : > { %v338_v11 = vpop.f32.mrf.mxu0 }
  0xcd   : > { %v343_v12 = vadd.f32 %v338_v11, %v255_v10 }
  0xcf   : > { %345 = vst [vmem:[#allocation2] sm:$0xff] %v343_v12 }
  0xd3   : > { %350 = sbr.rel (%p636_p0) target bundleno = 838 (0x346), region = 48 }
  0xd4   : > { %v340_v14 = vpop.f32.mrf.mxu0 }
  0xd5   : > { %v344_v15 = vadd.f32 %v340_v14, %v256_v13 }
  0xd7   : > { %346 = vst [vmem:[#allocation2 + $0x8] sm:$0xff] %v344_v15 }
  0xd8   : > { %v351_v16 = vld [vmem:[#allocation2] sm:$0xff]  ;;  %v909_v60 = vmov 1   ;;  %v910_v61 = vmov 2   ;;  %v911_v2 = vmov 0   ;;  %v445_v7 = vlaneseq }
  0xd9   : > { %355 = vrot.lane.b32.xlu0 %v351_v16, %s905_s23  ;;  %363 = vrot.lane.b32.xlu1 %v351_v16, %s906_s10 }
  0xda   : > { %733 = vset.pattern.permute.xlu0 %v909_v60  ;;  %732 = vset.pattern.permute.xlu2 %v910_v61  ;;  %v446_v9 = vand.u32 127, %v445_v7 }
  0xdb   : > { %731 = vset.pattern.permute.xlu1 %v910_v61 }
  0xdc   : > { %vm448_vm0 = vcmp.eq.s32.totalorder %v446_v9, 1  ;;  %vm449_vm1 = vcmp.eq.s32.totalorder %v446_v9, 2  ;;  %vm447_vm2 = vcmp.eq.s32.totalorder %v446_v9, 0 }
  0xde   : > { %v352_v17 = vld [vmem:[#allocation2 + $0x8] sm:$0xff] }
  0xe1   : > { %357 = vrot.lane.b32.xlu0 %v352_v17, %s905_s23  ;;  %365 = vrot.lane.b32.xlu1 %v352_v17, %s906_s10 }
 0x14b   : > { %v356_v18 = vpop.permute.xlu0 %355  ;;  %v364_v19 = vpop.permute.xlu1 %363 }
 0x14c   : > { %v361_v20 = vmax.f32 %v351_v16, %v356_v18 }
 0x14e   : > { %v369_v21 = vmax.f32 %v361_v20, %v364_v19 }
 0x150   : > { %391 = vrot.lane.b32.xlu0 %v369_v21, %s907_s11  ;;  %379 = vrot.lane.b32.xlu2 %v369_v21, %s908_s15  ;;  %v371_v46 = vsub.f32 %v351_v16, %v369_v21 }
 0x152   : > { %v373_v51 = vmul.f32 1.442695, %v371_v46 }
 0x153   : > { %v358_v22 = vpop.permute.xlu0 %357  ;;  %v366_v23 = vpop.permute.xlu1 %365 }
 0x154   : > { %v362_v24 = vmax.f32 %v352_v17, %v358_v22 }
 0x156   : > { %v370_v25 = vmax.f32 %v362_v24, %v366_v23 }
 0x158   : > { %381 = vrot.lane.b32.xlu2 %v370_v25, %s908_s15  ;;  %393 = vrot.lane.b32.xlu1 %v370_v25, %s907_s11  ;;  %v372_v42 = vsub.f32 %v352_v17, %v370_v25 }
 0x15a   : > { %v375_v43 = vmul.f32 1.442695, %v372_v42 }
 0x1aa   : > { %v380_v26 = vpop.permute.xlu2 %379 }
 0x1ab   : > { %v385_v27 = vsub.f32 %v351_v16, %v380_v26 }
 0x1ad   : > { %v387_v28 = vmul.f32 1.442695, %v385_v27 }
 0x1af   : > { %738 = vpow2.f32 %v387_v28 }
 0x1b2   : > { %v382_v29 = vpop.permute.xlu2 %381 }
 0x1b3   : > { %v386_v30 = vsub.f32 %v352_v17, %v382_v29 }
 0x1b5   : > { %v739_v31 = vpop.eup %738  ;;  %v389_v32 = vmul.f32 1.442695, %v386_v30 }
 0x1b6   : > { %405 = vrot.lane.b32.xlu2 %v739_v31, %s905_s23 }
 0x1b7   : > { %740 = vpow2.f32 %v389_v32 }
 0x1bd   : > { %v741_v33 = vpop.eup %740 }
 0x1be   : > { %407 = vrot.lane.b32.xlu0 %v741_v33, %s905_s23 }
 0x1c2   : > { %v392_v34 = vpop.permute.xlu0 %391 }
 0x1c3   : > { %v397_v35 = vsub.f32 %v351_v16, %v392_v34 }
 0x1c5   : > { %v399_v36 = vmul.f32 1.442695, %v397_v35 }
 0x1c7   : > { %742 = vpow2.f32 %v399_v36 }
 0x1ca   : > { %v394_v37 = vpop.permute.xlu1 %393 }
 0x1cb   : > { %v398_v38 = vsub.f32 %v352_v17, %v394_v37 }
 0x1cd   : > { %v743_v39 = vpop.eup %742  ;;  %v401_v40 = vmul.f32 1.442695, %v398_v38 }
 0x1ce   : > { %415 = vrot.lane.b32.xlu1 %v743_v39, %s906_s10 }
 0x1cf   : > { %744 = vpow2.f32 %v401_v40 }
 0x1d0   : > { %746 = vpow2.f32 %v375_v43 }
 0x1d5   : > { %v745_v41 = vpop.eup %744 }
 0x1d6   : > { %417 = vrot.lane.b32.xlu2 %v745_v41, %s906_s10  ;;  %v747_v45 = vpop.eup %746 }
 0x210   : > { %v406_v44 = vpop.permute.xlu2 %405 }
 0x230   : > { %v408_v47 = vpop.permute.xlu0 %407  ;;  %v418_v48 = vpop.permute.xlu2 %417 }
 0x231   : > { %v412_v49 = vadd.f32 %v747_v45, %v408_v47 }
 0x233   : > { %v422_v50 = vadd.f32 %v418_v48, %v412_v49 }
 0x235   : > { %748 = vrcp.f32 %v422_v50 }
 0x236   : > { %750 = vpow2.f32 %v373_v51 }
 0x23b   : > { %v749_v52 = vpop.eup %748 }
 0x23c   : > { %439 = vrot.lane.b32.xlu1 %v749_v52, %s907_s11  ;;  %v426_v53 = vmul.f32 %v749_v52, %v747_v45  ;;  %v751_v54 = vpop.eup %750 }
 0x23d   : > { %v411_v55 = vadd.f32 %v751_v54, %v406_v44 }
 0x240   : > { %v416_v56 = vpop.permute.xlu1 %415 }
 0x241   : > { %v421_v57 = vadd.f32 %v416_v56, %v411_v55 }
 0x243   : > { %752 = vrcp.f32 %v421_v57 }
 0x249   : > { %v753_v58 = vpop.eup %752 }
 0x24a   : > { %429 = vrot.lane.b32.xlu2 %v753_v58, %s908_s15  ;;  %437 = vrot.lane.b32.xlu0 %v753_v58, %s907_s11  ;;  %v425_v59 = vmul.f32 %v753_v58, %v751_v54 }
 0x252   : > { %431 = vrot.lane.b32.xlu0 %v749_v52, %s908_s15 }
 0x2a4   : > { %v430_v62 = vpop.permute.xlu2 %429 }
 0x2a5   : > { %v435_v63 = vmul.f32 %v739_v31, %v430_v62 }
 0x2a7   : > { %464 = vperm.xlu0 %733, %v435_v63  }
 0x2ae   : > { %v440_v0 = vpop.permute.xlu1 %439 }
 0x2af   : > { %v444_v1 = vmul.f32 %v745_v41, %v440_v0  ;;  %737 = vset.pattern.permute.xlu0 %v911_v2 }
 0x2b1   : > { %457 = vperm.xlu2 %732, %v444_v1  }
 0x2b9   : > { %735 = vset.pattern.permute.xlu2 %v911_v2 }
 0x2ba   : > { %476 = vperm.xlu2 %735, %v425_v59  }
 0x2bc   : > { %v438_v3 = vpop.permute.xlu0 %437 }
 0x2bd   : > { %v443_v4 = vmul.f32 %v743_v39, %v438_v3 }
 0x2bf   : > { %452 = vperm.xlu1 %731, %v443_v4  }
 0x2c4   : > { %v432_v5 = vpop.permute.xlu0 %431 }
 0x2c5   : > { %v436_v6 = vmul.f32 %v741_v33, %v432_v5 }
 0x2c7   : > { %734 = vset.pattern.permute.xlu1 %v909_v60 }
 0x2c8   : > { %469 = vperm.xlu1 %734, %v436_v6  }
 0x2d0   : > { %736 = vset.pattern.permute.xlu1 %v911_v2 }
 0x2d1   : > { %481 = vperm.xlu1 %736, %v426_v53  }
 0x30b   : > { %v458_v8 = vpop.permute.xlu2 %457 }
 0x30c   : > { %v461_v17 = vsel %vm449_vm1, %v458_v8, 0.0 }
 0x314   : > { %v477_v13 = vpop.permute.xlu2 %476 }
 0x319   : > { %v465_v11 = vpop.permute.xlu0 %464 }
 0x331   : > { %v453_v10 = vpop.permute.xlu1 %452 }
 0x332   : > { %v460_v12 = vsel %vm449_vm1, %v453_v10, 0.0 }
 0x333   : > { %v472_v14 = vsel %vm448_vm0, %v465_v11, %v460_v12 }
 0x334   : > { %v484_v15 = vsel %vm447_vm2, %v477_v13, %v472_v14 }
 0x335   : > { %486 = vst [vmem:[#allocation8] sm:$0xff] %v484_v15 }
 0x33a   : > { %v470_v16 = vpop.permute.xlu1 %469 }
 0x33b   : > { %v473_v18 = vsel %vm448_vm0, %v470_v16, %v461_v17 }
 0x343   : > { %v482_v19 = vpop.permute.xlu1 %481 }
 0x344   : > { %v485_v20 = vsel %vm447_vm2, %v482_v19, %v473_v18 }
 0x345   : > { %487 = vst [vmem:[#allocation8 + $0x8] sm:$0xff] %v485_v20 }
 0x346 PF: > { %p667_p1 = scmp.eq.s32.totalorder %s588_s18, 1  ;;  %s498_s26 = sshll.u32 %s1071_s3, 4  ;;  %s499_s26 = int_to_ptr.hbm [resolvable:$true] %s498_s26 }
 0x347   : > { %s912_s27 = smov [#allocation8]   ;;  %s913_s29 = smov 128  }
 0x348   : > { %s496_s28 = sshll.u32 %s912_s27, 4  ;;  %s914_s30 = smov 8   ;;  %s497_s28 = int_to_ptr.vmem [resolvable:$true] %s496_s28 }
 0x349   : > { %656 = dma.vmem_to_hbm [thread:$0]  (%p667_p1), %s497_s28, 256, %s499_s26, [#allocation5], %s913_s29, %s913_s29, %s914_s30  }
 0x34a   : > { %875 = dma.done.wait (%p667_p1), [#allocation5], 256  }
 0x34b   : > { %877 = vsyncadd (%p667_p1), [#allocation5], 4294967040 }
 0x34c PF: > { %s20_s17 = sadd.s32 1, %s900_s17   ;;  %s1075_s12 = smov %s884_s13 }
 0x34d   : > { %p17_p2 = scmp.ge.s32.totalorder %s20_s17, 4   ;;  %s1076_s13 = smov %s888_s14 }
 0x34e   : > { %s1077_s14 = smov %s986_s24  ;;  %s1078_s15 = smov %s896_s16 }
 0x34f   : > { %s1079_s16 = smov %s1081_s19  ;;  %19 = sbr.rel (!%p17_p2) target bundleno = 7 (0x7), region = 91 }
 0x354   :  { %515 = vsyncpa [#allocation4], 1 }
 0x355   :  { %517 = vsyncpa [#allocation4 + $0x1], 1 }
 0x356   :  { %518 = vsyncpa [#allocation7], 1 }
 0x357   :  { %520 = vsyncpa [#allocation7 + $0x1], 1 }
 0x358   :  { %521 = vsyncpa [#allocation5], 1 }
 0x359   :  { %523 = vsyncpa [#allocation5 + $0x1], 1 }

</bundles_post_ra>
